<compile_context>
chip_gen: v6e
topology: v6e:2x2x1
jax: 0.10.0
libtpu: 0.0.40
codegen_flags: <defaults>
</compile_context>

<pallas_src>
import functools

import jax
import jax.numpy as jnp
from jax.experimental import pallas as pl
from jax.experimental.pallas import tpu as pltpu


def linear_kernel(x_ref, w_ref, b_ref, o_ref):
    # x_ref: (TILE_N, 36), w_ref: (36, 12) [pre-transposed], b_ref: (1, 12)
    # MXU contraction with f32 accumulation, then bias add + cast on the VPU.
    acc = jnp.dot(x_ref[...], w_ref[...], preferred_element_type=jnp.float32)
    o_ref[...] = (acc + b_ref[...]).astype(o_ref.dtype)


@functools.partial(jax.jit, static_argnames=("tile_n",))
def linear_pallas(x, weight, bias, *, tile_n=16384):
    """x: (N, 36), weight: (12, 36) [PyTorch layout], bias: (12,) -> (N, 12)."""
    n, in_f = x.shape
    out_f = weight.shape[0]

    # Tile: multiple of 8 (sublane rule), no bigger than the (rounded-up) batch, and
    # capped at 16384 so the lane-padded, double-buffered x+out footprint (~2 KiB/row
    # in f32) stays ~32-36 MiB and fits v7x's 64 MiB physical VMEM.
    tile = min(int(tile_n), 16384, max(8, ((n + 7) // 8) * 8))
    n_blocks = pl.cdiv(n, tile)

    # Lane-padded (36 -> 128 lanes for x, 12 -> 128 lanes for out), double-buffered.
    itemsize = jnp.dtype(x.dtype).itemsize
    vmem_footprint = 2 * tile * 128 * itemsize * 2
    vmem_limit = int(min(max(vmem_footprint + (4 << 20), 32 << 20), 56 << 20))

    w_t = weight.T            # (36, 12): one-time tiny transpose, MXU-friendly layout
    b2d = bias.reshape(1, out_f)

    cost = pl.CostEstimate(
        flops=2 * n * in_f * out_f,
        bytes_accessed=n * (in_f + out_f) * itemsize
        + w_t.size * jnp.dtype(w_t.dtype).itemsize
        + out_f * jnp.dtype(bias.dtype).itemsize,
        transcendentals=0,
    )

    return pl.pallas_call(
        linear_kernel,
        out_shape=jax.ShapeDtypeStruct((n, out_f), x.dtype),
        grid_spec=pltpu.PrefetchScalarGridSpec(
            num_scalar_prefetch=0,
            grid=(n_blocks,),
            in_specs=[
                # x tiles stream along the batch axis (ragged last block allowed).
                pl.BlockSpec((tile, in_f), lambda i: (i, 0)),
                # weight / bias: constant index_map -> stay resident in VMEM.
                pl.BlockSpec((in_f, out_f), lambda i: (0, 0)),
                pl.BlockSpec((1, out_f), lambda i: (0, 0)),
            ],
            out_specs=pl.BlockSpec((tile, out_f), lambda i: (i, 0)),
        ),
        compiler_params=pltpu.CompilerParams(
            # Batch blocks are independent: shard across TensorCores where supported.
            dimension_semantics=("parallel",),
            vmem_limit_bytes=vmem_limit,
        ),
        cost_estimate=cost,
    )(x, w_t, b2d)


if __name__ == "__main__":
    key = jax.random.PRNGKey(0)
    kx, kw, kb, kx2, kx3 = jax.random.split(key, 5)

    IN_F, OUT_F = 36, 12

    # Deterministic "parameters" (same shapes as nn.Linear(36, 12)).
    bound = 1.0 / (IN_F ** 0.5)
    weight = jax.random.uniform(kw, (OUT_F, IN_F), jnp.float32, -bound, bound)
    bias = jax.random.uniform(kb, (OUT_F,), jnp.float32, -bound, bound)

    # Small batch (module-consistent demo shape), single (partial) block.
    N = 8
    x = jax.random.normal(kx, (N, IN_F), jnp.float32)
    y = linear_pallas(x, weight, bias)
    jax.block_until_ready(y)
    y_ref = x @ weight.T + bias
    assert y.shape == (N, OUT_F)
    assert jnp.allclose(y, y_ref, atol=1e-5, rtol=1e-5)

    # Multi-block grid with a ragged last block (2000 % 512 != 0) -> exercises the
    # masked-edge write path with no wrapper pad/slice.
    N2 = 2000
    x2 = jax.random.normal(kx2, (N2, IN_F), jnp.float32)
    y2 = linear_pallas(x2, weight, bias, tile_n=512)
    jax.block_until_ready(y2)
    y2_ref = x2 @ weight.T + bias
    assert y2.shape == (N2, OUT_F)
    assert jnp.allclose(y2, y2_ref, atol=1e-5, rtol=1e-5)

    # Batch not a multiple of 8 at the default (large) tile.
    N3 = 1003
    x3 = jax.random.normal(kx3, (N3, IN_F), jnp.float32)
    y3 = linear_pallas(x3, weight, bias)
    jax.block_until_ready(y3)
    y3_ref = x3 @ weight.T + bias
    assert y3.shape == (N3, OUT_F)
    assert jnp.allclose(y3, y3_ref, atol=1e-5, rtol=1e-5)

    print("KERNEL_OK")
</pallas_src>

<mosaic_0001>
module attributes {stable_mosaic.version = 11 : i64} {
  func.func @linear_kernel(%arg0: i32, %arg1: memref<8x36xf32, #tpu.memory_space<vmem>>, %arg2: memref<36x12xf32, #tpu.memory_space<vmem>>, %arg3: memref<1x12xf32, #tpu.memory_space<vmem>>, %arg4: memref<8x12xf32, #tpu.memory_space<vmem>>) attributes {dimension_semantics = [#tpu.dimension_semantics<parallel>], iteration_bounds = array<i64: 1>, scalar_prefetch = 0 : i64, scratch_operands = 0 : i64, tpu.core_type = #tpu.core_type<tc>, window_params = [{transform_indices = @transform_0, window_bounds = array<i64: 8, 36>}, {pipeline_mode = #tpu.pipeline_mode<synchronous>, transform_indices = @transform_1, window_bounds = array<i64: 36, 12>}, {pipeline_mode = #tpu.pipeline_mode<synchronous>, transform_indices = @transform_2, window_bounds = array<i64: 1, 12>}, {transform_indices = @transform_3, window_bounds = array<i64: 8, 12>}]} {
    %c0 = arith.constant 0 : index
    %c0_0 = arith.constant 0 : index
    %0 = vector.load %arg1[%c0, %c0_0] : memref<8x36xf32, #tpu.memory_space<vmem>>, vector<8x36xf32>
    %c0_1 = arith.constant 0 : index
    %c0_2 = arith.constant 0 : index
    %1 = vector.load %arg2[%c0_1, %c0_2] : memref<36x12xf32, #tpu.memory_space<vmem>>, vector<36x12xf32>
    %cst = arith.constant dense<0.000000e+00> : vector<8x12xf32>
    %2 = tpu.matmul %0, %1, %cst {dimension_numbers = #tpu.dot_dimension_numbers<[1], [0], [0], [1], [0, 0, 1, 1], [], []>} : vector<8x36xf32>, vector<36x12xf32>, vector<8x12xf32> -> vector<8x12xf32>
    %c0_3 = arith.constant 0 : index
    %c0_4 = arith.constant 0 : index
    %3 = vector.load %arg3[%c0_3, %c0_4] : memref<1x12xf32, #tpu.memory_space<vmem>>, vector<1x12xf32>
    %4 = vector.broadcast %3 : vector<1x12xf32> to vector<8x12xf32>
    %5 = arith.addf %2, %4 : vector<8x12xf32>
    %c0_5 = arith.constant 0 : index
    %c0_6 = arith.constant 0 : index
    %6 = vector.load %arg4[%c0_5, %c0_6] : memref<8x12xf32, #tpu.memory_space<vmem>>, vector<8x12xf32>
    tpu.vector_store %arg4[%c0_5, %c0_6], %5 {strides = array<i32>} : memref<8x12xf32, #tpu.memory_space<vmem>>, vector<8x12xf32>,
    return
  }
  func.func @transform_0(%arg0: i32) -> (i32, i32) {
    %c0_i32 = arith.constant 0 : i32
    %c0_i32_0 = arith.constant 0 : i32
    return %arg0, %c0_i32 : i32, i32
  }
  func.func @transform_1(%arg0: i32) -> (i32, i32) {
    %c0_i32 = arith.constant 0 : i32
    %c0_i32_0 = arith.constant 0 : i32
    %c0_i32_1 = arith.constant 0 : i32
    return %c0_i32, %c0_i32_0 : i32, i32
  }
  func.func @transform_2(%arg0: i32) -> (i32, i32) {
    %c0_i32 = arith.constant 0 : i32
    %c0_i32_0 = arith.constant 0 : i32
    %c0_i32_1 = arith.constant 0 : i32
    return %c0_i32, %c0_i32_0 : i32, i32
  }
  func.func @transform_3(%arg0: i32) -> (i32, i32) {
    %c0_i32 = arith.constant 0 : i32
    %c0_i32_0 = arith.constant 0 : i32
    return %arg0, %c0_i32 : i32, i32
  }
}

</mosaic_0001>

<bundles_post_ra>
// kernel: linear_pallas.1
= control target key start
LH: loop header
LB: loop body
LE: loop exit
PB: predicated region body
PF: predicated region fallthrough
CT: control target
= control target key end

     0   :  { %vm32_vm0 = vcmask 1043456   ;;  %v169_v1 = vmov 0.0   ;;  %vm170_vm1 = vmmov 0   ;;  %s216_s0 = inlined_call_operand.vmem [shape: f32[8,36], index: 0, kind: input, shape index: {}]   ;;  %s217_s1 = inlined_call_operand.vmem [shape: f32[36,12], index: 1, kind: input, shape index: {}]   ;;  %s218_s2 = inlined_call_operand.vmem [shape: f32[1,12], index: 2, kind: input, shape index: {}]   ;;  %s219_s3 = inlined_call_operand.hbm [shape: f32[8,12], index: 3, kind: output, shape index: {}]  }
   0x1   :  { %v20_v0 = vld [vmem:[%s217_s1 + $0x20] sm:$0xf]  ;;  %131 = vmatprep.subr.mxu0 %v169_v1  ;;  %v19_v2 = vld [vmem:[%s217_s1 + $0x18] sm:$0xff]  ;;  %141 = vmatprep.mubr.msk.f32.mxu0 %vm170_vm1, %v169_v1 }
   0x2   :  { %132 = vmatpush3.msk.msra.mxu0 %vm32_vm0, %v20_v0 }
   0x3   :  { %8 = vsyncpa [#allocation3], 0  ;;  %133 = vmatprep.subr.mxu0 %v169_v1  ;;  %v18_v3 = vld [vmem:[%s217_s1 + $0x10] sm:$0xff]  ;;  %v17_v4 = vld [vmem:[%s217_s1 + $0x8] sm:$0xff]  ;;  %vm28_vm2 = vcmask 293888   ;;  %s171_s26 = smov [#allocation2]  }
   0x4   :  { %134 = vmatpush3.msra.mxu0 %v19_v2  ;;  %v16_v5 = vld [vmem:[%s217_s1] sm:$0xff]  ;;  %s114_s27 = sshll.u32 %s171_s26, 4  ;;  %vm106_vm3 = vcmask 97280   ;;  %s115_s27 = int_to_ptr.vmem [resolvable:$true] %s114_s27 }
   0x5   :  { %135 = vmatprep.subr.mxu0 %v169_v1  ;;  %v15_v6 = vld [vmem:[%s216_s0] sm:$0xff]  ;;  %s147_s1 = scalar_lea.vmem %s115_s27, 128  ;;  %p152_p1 = scmp.lt.s32.totalorder %s115_s27, %s115_s27 }
   0x6   :  { %136 = vmatpush3.msra.mxu0 %v18_v3  ;;  %v122_v7 = vld [vmem:[%s218_s2] ss:$0 sm:$0xff]  ;;  %p148_p0 = scmp.ne.s32.totalorder %s115_s27, %s147_s1  ;;  %p153_p2 = scmp.lt.s32.totalorder %s147_s1, %s147_s1 }
   0x7   :  { %137 = vmatprep.subr.mxu0 %v169_v1 }
   0x8   :  { %138 = vmatpush3.msra.mxu0 %v17_v4  ;;  %p154_p3 = por %p153_p2, %p152_p1 }
   0x9   :  { %139 = vmatprep.subr.mxu0 %v169_v1 }
   0xa   :  { %140 = vmatpush3.msra.mxu0 %v16_v5  ;;  %p155_p4 = pnand %p154_p3, %p148_p0 }
   0xb   :  { %142 = vmatmul.mubr.msk.f32.vlgmr.msra.gmra.mxu0 %vm28_vm2, %v15_v6 }
  0xcb   :  { %v102_v8 = vpop.f32.mrf.mxu0 }
  0xcc   :  { %v103_v9 = vadd.f32 %v122_v7, %v102_v8 }
  0xcd   :  { %v143_v10 = vpop.f32.mrf.mxu0 }
  0xce   :  { %107 = vst.msk [vmem:[#allocation2] sm:$0xff] %vm106_vm3, %v103_v9 }
  0xcf   :  { %158 = shalt.err (!%p155_p4)
}
  0xd0   :  { %117 = dma.vmem_to_hbm [thread:$0]  %s115_s27, 128, %s219_s3, [#allocation3]  }
  0xd1   :  { %167 = dma.done.wait [#allocation3], 128  }
  0xd2   :  { %168 = vsyncadd [#allocation3], 4294967168 }
  0xd3   :  { %121 = vsyncpa [#allocation3], 1 }

</bundles_post_ra>
